<compile_context>
chip_gen: v7x
topology: tpu7x:2x2x1
jax: 0.10.0
libtpu: 0.0.40
codegen_flags: <defaults>
</compile_context>

<pallas_src>
import functools

import jax
import jax.numpy as jnp
from jax.experimental import pallas as pl
from jax.experimental.pallas import tpu as pltpu


def _round_up(x, m):
    return ((x + m - 1) // m) * m


def _cdiv(a, b):
    return (a + b - 1) // b


_VMEM_BUDGET = 24 * 1024 * 1024   # target working set for kernel buffers
_VMEM_LIMIT = 40 * 1024 * 1024    # scoped VMEM limit (fits v7x's 64 MiB)


def _maybe_buffered(shape, index_map, depth):
    """BlockSpec with deeper pipelining when the API supports it."""
    buffered = getattr(pl, "Buffered", None)
    if buffered is not None:
        try:
            return pl.BlockSpec(shape, index_map, pipeline_mode=buffered(depth))
        except Exception:
            pass
    return pl.BlockSpec(shape, index_map)


def _pick_tm(B):
    """Largest M tile keeping M padding within ~12.5% of the minimum."""
    base = _round_up(B, 8)
    budget = base + base // 8
    for tm in (512, 256, 128, 64, 32, 16, 8):
        if _round_up(B, tm) <= budget:
            return tm
    return 8


def _footprint(tm, tk, tn, single_k, w_depth):
    bx = 2 * tm * tk * 4            # f32 activations, double-buffered
    bw = w_depth * tk * tn * 2      # bf16 weights
    bo = 2 * tm * tn * 4            # f32 output tiles, double-buffered
    bb = 2 * tn * 4                 # bias
    bacc = 0 if single_k else tm * tn * 4
    return bx + bw + bo + bb + bacc


def _pick_tiles(B, Kp, Np):
    # N tile: multiple of 256 -> full-width 256x256 MXU on v6e/v7x.
    tn = 512 if Np % 512 == 0 else 256
    tm = _pick_tm(B)
    # v7x megacore: prefer >= 2 iterations on at least one parallel axis.
    if _cdiv(B, tm) == 1 and Np // tn == 1:
        if Np // 256 >= 2:
            tn = 256
        else:
            while tm > 8 and _cdiv(B, tm) < 2:
                tm //= 2
    # K tile: take the whole padded K strip when it fits -> no K grid axis.
    if _footprint(tm, Kp, tn, True, 2) <= _VMEM_BUDGET:
        return tm, Kp, tn, True
    for tk in (2048, 1024, 512, 256, 128):
        if Kp % tk == 0 and _footprint(tm, tk, tn, False, 3) <= _VMEM_BUDGET:
            return tm, tk, tn, False
    return tm, 128, tn, False


def _linear_bias_kernel(x_ref, w_ref, b_ref, o_ref):
    # Whole K strip resident in VMEM: one MXU contraction + bias add + store.
    x = x_ref[...].astype(jnp.bfloat16)          # VPU cast hides under the MXU
    acc = jnp.dot(x, w_ref[...], preferred_element_type=jnp.float32)
    o_ref[...] = (acc + b_ref[...]).astype(o_ref.dtype)


def _linear_bias_kernel_ktiled(x_ref, w_ref, b_ref, o_ref, acc_ref):
    # K-tiled variant: f32 accumulator resident across the (innermost) K axis.
    k = pl.program_id(2)

    @pl.when(k == 0)
    def _():
        acc_ref[...] = jnp.zeros_like(acc_ref)

    acc_ref[...] += jnp.dot(
        x_ref[...].astype(jnp.bfloat16), w_ref[...],
        preferred_element_type=jnp.float32)

    @pl.when(k == pl.num_programs(2) - 1)
    def _():
        o_ref[...] = (acc_ref[...] + b_ref[...]).astype(o_ref.dtype)


@functools.partial(jax.jit, static_argnames=("n_out",))
def lazy_myfunc_forward(x, w_t_pad, bias_pad, n_out):
    """out = x @ W.T + (W @ const)  ==  (x + const) @ W.T.

    x:        (B, K)   float
    w_t_pad:  (Kp, Np) bf16  -- W.T zero-padded to 128/256 multiples
    bias_pad: (1, Np)  f32   -- (W @ const) zero-padded
    returns   (B, n_out) in x.dtype
    """
    B, K = x.shape
    Kp, Np = w_t_pad.shape

    tm, tk, tn, single_k = _pick_tiles(B, Kp, Np)

    # Pad only the contraction dim when needed (zero K-pad keeps the matmul
    # exact; fuses under jit).  M uses a cdiv grid with a clipped last tile.
    if Kp != K:
        x = jnp.pad(x, ((0, 0), (0, Kp - K)))

    gm = _cdiv(B, tm)
    gn = Np // tn

    cost = pl.CostEstimate(
        flops=2 * B * Np * Kp,
        transcendentals=0,
        bytes_accessed=(B * Kp * 4 * gn          # x re-streamed per N tile
                        + Kp * Np * 2 * gm       # W re-streamed per M tile
                        + Np * 4
                        + B * Np * 4),
    )

    if single_k:
        out = pl.pallas_call(
            _linear_bias_kernel,
            out_shape=jax.ShapeDtypeStruct((B, Np), x.dtype),
            grid=(gm, gn),
            in_specs=[
                pl.BlockSpec((tm, tk), lambda i, j: (i, 0)),   # x strip
                pl.BlockSpec((tk, tn), lambda i, j: (0, j)),   # W.T strip
                pl.BlockSpec((1, tn), lambda i, j: (0, j)),    # bias
            ],
            out_specs=pl.BlockSpec((tm, tn), lambda i, j: (i, j)),
            compiler_params=pltpu.CompilerParams(
                dimension_semantics=("parallel", "parallel"),
                vmem_limit_bytes=_VMEM_LIMIT,
            ),
            cost_estimate=cost,
        )(x, w_t_pad, bias_pad)
    else:
        out = pl.pallas_call(
            _linear_bias_kernel_ktiled,
            out_shape=jax.ShapeDtypeStruct((B, Np), x.dtype),
            grid=(gm, gn, Kp // tk),
            in_specs=[
                pl.BlockSpec((tm, tk), lambda i, j, k: (i, k)),            # x
                _maybe_buffered((tk, tn), lambda i, j, k: (k, j), 3),      # W.T
                pl.BlockSpec((1, tn), lambda i, j, k: (0, j)),             # bias
            ],
            out_specs=pl.BlockSpec((tm, tn), lambda i, j, k: (i, j)),
            scratch_shapes=[pltpu.VMEM((tm, tn), jnp.float32)],
            compiler_params=pltpu.CompilerParams(
                dimension_semantics=("parallel", "parallel", "arbitrary"),
                vmem_limit_bytes=_VMEM_LIMIT,
            ),
            cost_estimate=cost,
        )(x, w_t_pad, bias_pad)

    if Np != n_out:
        out = out[:, :n_out]
    return out


class LazyMyFuncJax:
    """JAX analogue of _LazyMyFunc: in_features resolved lazily from input."""

    def __init__(self, in_features, out_features, seed=0):
        self.in_features = in_features
        self.out_features = out_features
        self.weight = None      # (out_features, in_features) f32, PyTorch layout
        self.const = None       # (in_features,) f32 ones
        self._seed = seed
        if in_features is not None:
            self._materialize(in_features)

    def _materialize(self, in_features):
        # TODO(synk): UninitializedParameter / lazy registration hooks have no
        # Pallas equivalent; the lazy shape resolution lives here in Python.
        self.in_features = K = in_features
        N = self.out_features
        key = jax.random.PRNGKey(self._seed)
        # _reset_params: weight.uniform_(-0.1, 0.1), shape (out, in)
        self.weight = jax.random.uniform(
            key, (N, K), minval=-0.1, maxval=0.1, dtype=jnp.float32)
        # const buffer: full((in_features,), 1.0)
        self.const = jnp.full((K,), 1.0, dtype=jnp.float32)

        # ---- one-time kernel-side precomputation ----
        # NOTE: operands are fed to the MXU in bf16 with an f32 accumulator;
        # results differ from f32 PyTorch by bf16 input rounding.
        Kp = _round_up(K, 128)      # lane-aligned contraction dim
        Np = _round_up(N, 256)      # 256-multiple -> full-width MXU on v6e/v7x
        bias = self.weight @ self.const              # (N,) f32, const folded
        w_t = self.weight.T                          # (K, N) canonical MXU RHS
        self._w_t_pad = (
            jnp.zeros((Kp, Np), jnp.bfloat16)
            .at[:K, :N].set(w_t.astype(jnp.bfloat16))
        )
        self._bias_pad = jnp.zeros((1, Np), jnp.float32).at[0, :N].set(bias)

    def __call__(self, x):
        if self.weight is None:
            self._materialize(x.shape[-1])
        lead = x.shape[:-1]
        x2 = x.reshape((-1, x.shape[-1])) if x.ndim != 2 else x
        out = lazy_myfunc_forward(
            x2, self._w_t_pad, self._bias_pad, self.out_features)
        return out.reshape(lead + (self.out_features,))


if __name__ == "__main__":
    key = jax.random.PRNGKey(0)
    batch, in_features, out_features = 8, 32, 16

    x = jax.random.normal(key, (batch, in_features), dtype=jnp.float32)

    # in_features=None -> lazily determined from the first input (like _LazyMyFunc)
    module = LazyMyFuncJax(None, out_features, seed=0)
    out = module(x)
    out = jax.block_until_ready(out)

    # Reference check in plain f32 JAX (bf16 MXU operands, f32 accumulate).
    ref = (x + module.const) @ module.weight.T
    assert out.shape == (batch, out_features)
    assert out.dtype == x.dtype
    assert jnp.allclose(out, ref, atol=1e-1, rtol=5e-2), "mismatch vs reference"

    print("KERNEL_OK")
</pallas_src>

<mosaic_0001>
module attributes {stable_mosaic.version = 11 : i64} {
  func.func @_linear_bias_kernel(%arg0: i32, %arg1: i32, %arg2: memref<8x128xf32, #tpu.memory_space<vmem>>, %arg3: memref<128x256xbf16, #tpu.memory_space<vmem>>, %arg4: memref<1x256xf32, #tpu.memory_space<vmem>>, %arg5: memref<8x256xf32, #tpu.memory_space<vmem>>) attributes {dimension_semantics = [#tpu.dimension_semantics<parallel>, #tpu.dimension_semantics<parallel>], iteration_bounds = array<i64: 1, 1>, scalar_prefetch = 0 : i64, scratch_operands = 0 : i64, tpu.core_type = #tpu.core_type<tc>, window_params = [{transform_indices = @transform_0, window_bounds = array<i64: 8, 128>}, {transform_indices = @transform_1, window_bounds = array<i64: 128, 256>}, {transform_indices = @transform_2, window_bounds = array<i64: 1, 256>}, {transform_indices = @transform_3, window_bounds = array<i64: 8, 256>}]} {
    %c0 = arith.constant 0 : index
    %c0_0 = arith.constant 0 : index
    %0 = vector.load %arg2[%c0, %c0_0] : memref<8x128xf32, #tpu.memory_space<vmem>>, vector<8x128xf32>
    %1 = arith.truncf %0 : vector<8x128xf32> to vector<8x128xbf16>
    %c0_1 = arith.constant 0 : index
    %c0_2 = arith.constant 0 : index
    %2 = vector.load %arg3[%c0_1, %c0_2] : memref<128x256xbf16, #tpu.memory_space<vmem>>, vector<128x256xbf16>
    %cst = arith.constant dense<0.000000e+00> : vector<8x256xf32>
    %3 = tpu.matmul %1, %2, %cst {dimension_numbers = #tpu.dot_dimension_numbers<[1], [0], [0], [1], [0, 0, 1, 1], [], []>} : vector<8x128xbf16>, vector<128x256xbf16>, vector<8x256xf32> -> vector<8x256xf32>
    %c0_3 = arith.constant 0 : index
    %c0_4 = arith.constant 0 : index
    %4 = vector.load %arg4[%c0_3, %c0_4] : memref<1x256xf32, #tpu.memory_space<vmem>>, vector<1x256xf32>
    %5 = vector.broadcast %4 : vector<1x256xf32> to vector<8x256xf32>
    %6 = arith.addf %3, %5 : vector<8x256xf32>
    %c0_5 = arith.constant 0 : index
    %c0_6 = arith.constant 0 : index
    %7 = vector.load %arg5[%c0_5, %c0_6] : memref<8x256xf32, #tpu.memory_space<vmem>>, vector<8x256xf32>
    tpu.vector_store %arg5[%c0_5, %c0_6], %6 {strides = array<i32>} : memref<8x256xf32, #tpu.memory_space<vmem>>, vector<8x256xf32>,
    return
  }
  func.func @transform_0(%arg0: i32, %arg1: i32) -> (i32, i32) {
    %c0_i32 = arith.constant 0 : i32
    %c0_i32_0 = arith.constant 0 : i32
    return %arg0, %c0_i32 : i32, i32
  }
  func.func @transform_1(%arg0: i32, %arg1: i32) -> (i32, i32) {
    %c0_i32 = arith.constant 0 : i32
    %c0_i32_0 = arith.constant 0 : i32
    return %c0_i32, %arg1 : i32, i32
  }
  func.func @transform_2(%arg0: i32, %arg1: i32) -> (i32, i32) {
    %c0_i32 = arith.constant 0 : i32
    %c0_i32_0 = arith.constant 0 : i32
    return %c0_i32, %arg1 : i32, i32
  }
  func.func @transform_3(%arg0: i32, %arg1: i32) -> (i32, i32) {
    %c0_i32 = arith.constant 0 : i32
    return %arg0, %arg1 : i32, i32
  }
}

</mosaic_0001>

<bundles_post_ra>
// kernel: lazy_myfunc_forward.1
= control target key start
LH: loop header
LB: loop body
LE: loop exit
PB: predicated region body
PF: predicated region fallthrough
CT: control target
= control target key end

     0   :  { %8 = vsyncpa [#allocation3], 0  ;;  %s255_s12 = smov [#allocation2]   ;;  %s303_s0 = inlined_call_operand.vmem [shape: f32[8,128], index: 0, kind: input, shape index: {}]   ;;  %s304_s1 = inlined_call_operand.hbm [shape: bf16[128,256], index: 1, kind: input, shape index: {}]   ;;  %s305_s2 = inlined_call_operand.vmem [shape: f32[1,256], index: 2, kind: input, shape index: {}]   ;;  %s306_s3 = inlined_call_operand.vmem [shape: f32[8,256], index: 3, kind: output, shape index: {}]  }
   0x1   :  { %s16_s13 = sshll.u32 %s255_s12, 4  ;;  %s231_s16 = scalar_lea.hbm %s304_s1, 2048  ;;  %s17_s13 = int_to_ptr.vmem [resolvable:$true] %s16_s13 }
   0x2   :  { %p232_p0 = scmp.ne.s32.totalorder %s304_s1, %s231_s16  ;;  %p235_p1 = scmp.lt.u32.totalorder %s231_s16, %s304_s1 }
   0x4   :  { %p237_p2 = pnand %p235_p1, %p232_p0 }
   0x6   :  { %240 = shalt.err (!%p237_p2)
}
   0x7   :  { %s241_s21 = scalar_lea.vmem %s17_s13, 2048  ;;  %p246_p4 = scmp.lt.s32.totalorder %s17_s13, %s17_s13 }
   0x8   :  { %p242_p3 = scmp.ne.s32.totalorder %s17_s13, %s241_s21  ;;  %p247_p5 = scmp.lt.s32.totalorder %s241_s21, %s241_s21 }
   0xa   :  { %p248_p6 = por %p247_p5, %p246_p4 }
   0xc   :  { %p249_p7 = pnand %p248_p6, %p242_p3 }
   0xe   :  { %252 = shalt.err (!%p249_p7)
}
   0xf   :  { %s256_s22 = smov 128   ;;  %s257_s23 = smov 8  }
  0x10   :  { %22 = dma.hbm_to_vmem [thread:$0]  %s304_s1, 2048, %s17_s13, [#allocation3], %s256_s22, %s256_s22, %s257_s23  }
  0x11   :  { %253 = dma.done.wait [#allocation3], 2048  }
  0x12   :  { %254 = vsyncadd [#allocation3], 4294965248  ;;  %v258_v0 = vmov 0   ;;  %v207_v1 = vld [vmem:[#allocation2 + $0x4] ss:$8 sps:$4 sm:$0xff]   ;;  %v49_v19 = vlaneseq }
  0x13   :  { %171 = vmatprep.mubr.bf16.mxu0 %v258_v0  ;;  %v209_v2 = vld [vmem:[#allocation2] ss:$8 sps:$4 sm:$0xff]   ;;  %139 = vmatprep.subr.bf16.mxu0 %v207_v1  ;;  %v210_v3 = vld [vmem:[#allocation2 + $0x14] ss:$8 sps:$4 sm:$0xff]   ;;  %v212_v4 = vld [vmem:[#allocation2 + $0x10] ss:$8 sps:$4 sm:$0xff]  }
  0x14   :  { %140 = vmatpush1.bf16.msra.mxu0 %v209_v2  ;;  %v213_v5 = vld [vmem:[#allocation2 + $0x24] ss:$8 sps:$4 sm:$0xff]   ;;  %v215_v6 = vld [vmem:[#allocation2 + $0x20] ss:$8 sps:$4 sm:$0xff]   ;;  %v216_v7 = vld [vmem:[#allocation2 + $0x34] ss:$8 sps:$4 sm:$0xff]  }
  0x15   :  { %141 = vmatprep.subr.bf16.mxu0 %v210_v3  ;;  %v218_v8 = vld [vmem:[#allocation2 + $0x30] ss:$8 sps:$4 sm:$0xff]   ;;  %v219_v9 = vld [vmem:[#allocation2 + $0x44] ss:$8 sps:$4 sm:$0xff]   ;;  %v221_v10 = vld [vmem:[#allocation2 + $0x40] ss:$8 sps:$4 sm:$0xff]  }
  0x16   :  { %v222_v11 = vld [vmem:[#allocation2 + $0x54] ss:$8 sps:$4 sm:$0xff]   ;;  %v224_v12 = vld [vmem:[#allocation2 + $0x50] ss:$8 sps:$4 sm:$0xff]   ;;  %v225_v13 = vld [vmem:[#allocation2 + $0x64] ss:$8 sps:$4 sm:$0xff]  }
  0x17   :  { %v227_v14 = vld [vmem:[#allocation2 + $0x60] ss:$8 sps:$4 sm:$0xff]   ;;  %v228_v15 = vld [vmem:[#allocation2 + $0x74] ss:$8 sps:$4 sm:$0xff]   ;;  %v230_v16 = vld [vmem:[#allocation2 + $0x70] ss:$8 sps:$4 sm:$0xff]  }
  0x18   :  { %142 = vmatpush1.bf16.msra.mxu0 %v212_v4  ;;  %v29_v17 = vld [vmem:[%s303_s0] sm:$0xff]  ;;  %v50_v20 = vshrl.u32 %v49_v19, 7 }
  0x19   :  { %143 = vmatprep.subr.bf16.mxu0 %v213_v5  ;;  %v30_v18 = vpack.c.bf16 %v29_v17, %v29_v17  ;;  %v47_v22 = vld [vmem:[%s305_s2] sm:$0x3] }
  0x1a   :  { %v51_v21 = vsub.s32 0, %v50_v20  ;;  %v55_v23 = vsub.s32 1, %v50_v20 }
  0x1c   :  { %144 = vmatpush1.bf16.msra.mxu0 %v215_v6  ;;  %v52_v24 = vrot.slane %v47_v22, %v51_v21  ;;  %v56_v25 = vrot.slane %v47_v22, %v55_v23 }
  0x1d   :  { %145 = vmatprep.subr.bf16.mxu0 %v216_v7 }
  0x20   :  { %146 = vmatpush1.bf16.msra.mxu0 %v218_v8 }
  0x21   :  { %147 = vmatprep.subr.bf16.mxu0 %v219_v9 }
  0x24   :  { %148 = vmatpush1.bf16.msra.mxu0 %v221_v10 }
  0x25   :  { %149 = vmatprep.subr.bf16.mxu0 %v222_v11 }
  0x28   :  { %150 = vmatpush1.bf16.msra.mxu0 %v224_v12 }
  0x29   :  { %151 = vmatprep.subr.bf16.mxu0 %v225_v13 }
  0x2c   :  { %152 = vmatpush1.bf16.msra.mxu0 %v227_v14 }
  0x2d   :  { %153 = vmatprep.subr.bf16.mxu0 %v228_v15 }
  0x30   :  { %154 = vmatpush1.bf16.msra.mxu0 %v230_v16 }
  0x33   :  { %172 = vmatmul.mubr.bf16.vlgmr.msra.gmra.mrb[0].mxu0 %v30_v18 }
 0x106   :  { %v173_v26 = vpop.f32.mrb[0].mxu0 }
 0x107   :  { %v174_v27 = vadd.f32 %v173_v26, %v52_v24  ;;  %v175_v28 = vpop.f32.mrb[1].mxu0 }
 0x108   :  { %v176_v29 = vadd.f32 %v175_v28, %v56_v25  ;;  %v177_v30 = vpop.f32.mrb[2].mxu0 }
 0x109   :  { %180 = vst [vmem:[%s306_s3] sm:$0xff] %v174_v27  ;;  %v178_v31 = vpop.f32.mrb[3].mxu0 }
 0x10a   :  { %181 = vst [vmem:[%s306_s3 + $0x8] sm:$0xff] %v176_v29 }
 0x10b   :  { %186 = vsyncpa [#allocation3], 1 }

</bundles_post_ra>
